<compile_context>
chip_gen: v6e
topology: v6e:2x2x1
jax: 0.10.0
libtpu: 0.0.40
codegen_flags: <defaults>
</compile_context>

<pallas_src>
import jax
import jax.numpy as jnp
from jax.experimental import pallas as pl
from jax.experimental.pallas import tpu as pltpu


def attention_kernel(enc_ref, dec_ref, w1t_ref, w2t_ref, w4_ref, out_ref):
    BB, T, H = enc_ref.shape
    mxu_dtype = w1t_ref.dtype

    enc = enc_ref[...]                                    # (BB, T, H), f32 or bf16
    dec = dec_ref[...]                                    # (BB, H)

    # ln1 / ln2: bias-free Linear; weights pre-transposed to (in, out) and
    # cast to the MXU dtype once off the hot path; f32 accumulation.
    out_s = jnp.dot(enc.astype(mxu_dtype).reshape(BB * T, H), w1t_ref[...],
                    preferred_element_type=jnp.float32)   # (BB*T, H)
    out_h = jnp.dot(dec.astype(mxu_dtype), w2t_ref[...],
                    preferred_element_type=jnp.float32)   # (BB, H)

    # ln3: tanh of the broadcast sum (f32 on VPU/EUP; v5e has no bf16 EUP).
    # TODO(synk): on v6e/v7x a bf16 tanh/exp roughly doubles EUP throughput
    # once the kernel is compute-bound; kept f32 for cross-generation safety.
    t = jnp.tanh(out_s.reshape(BB, T, H) + out_h.reshape(BB, 1, H))   # (BB, T, H)

    # ln4: Linear(H -> 1, no bias) == lane-reduce against w4 -> lane-dense
    # (BB, T) scores with T on the 128-lane axis.
    score = jnp.sum(t * w4_ref[...], axis=-1)             # (BB, T), f32

    # softmax over T (torch dim=1) along the last (lane) axis at full VPU width.
    m = jnp.max(score, axis=-1, keepdims=True)            # (BB, 1)
    e = jnp.exp(score - m)                                 # (BB, T)
    denom = jnp.sum(e, axis=-1, keepdims=True)             # (BB, 1)
    weight = e * pl.reciprocal(denom, approx=True)         # EUP slot

    # Attention-weighted sum of the encoder states over T; always accumulate
    # in f32 even when the encoder is streamed as bf16.
    ctx = jnp.sum(weight[:, :, None] * enc.astype(jnp.float32), axis=1)   # (BB, H)
    out_ref[...] = ctx.astype(out_ref.dtype)


def prepare_attention_params(w1, w2, w4, mxu_dtype=jnp.bfloat16):
    """One-time weight prep (keep OFF the hot path / cache the result):
    transpose torch's (out, in) Linear weights to (in, out) and cast the (H, H)
    matmul operands to the MXU dtype.  w4 stays f32 (used on the VPU only)."""
    return (jnp.asarray(w1).T.astype(mxu_dtype),
            jnp.asarray(w2).T.astype(mxu_dtype),
            jnp.asarray(w4).astype(jnp.float32))


def _tpu_vmem_budget_and_cores():
    """Scoped-VMEM budget (bytes) to size tiles against and TensorCores per
    chip (so v7x keeps >= num_cores parallel grid steps).  Defensive: falls
    back to the conservative 32 MiB / 1-core defaults if the query fails."""
    budget = 32 << 20
    num_cores = 1
    try:
        info = pltpu.get_tpu_info()
        cap = getattr(info, "vmem_capacity_bytes", None)
        if cap:
            budget = min(budget, int(cap) // 2)   # leave headroom below physical
        for name in ("num_cores", "tensorcore_count",
                     "num_tensorcores", "cores_per_chip"):
            v = getattr(info, name, None)
            if v:
                num_cores = max(num_cores, int(v))
                break
    except Exception:
        pass
    return int(budget), int(num_cores)


def _pick_block_b(B, T, H, enc_bytes, dec_bytes, out_bytes, vmem_budget, num_cores):
    """Largest divisor of B whose (double-buffered) tiles fit the VMEM budget,
    subject to:
      * bb == B or bb % 8 == 0: keeps the flattened (bb, H) decoder/output
        blocks sublane-aligned (full unmasked stores, no (8,128) issues);
      * when the chip has >= 2 TensorCores, keep >= num_cores grid steps so
        the "parallel" grid axis feeds every core; single-core chips take the
        whole batch in one step (no per-step overhead duplication)."""
    weight_bytes = 2 * (2 * H * H * 2 + H * 4)     # w1t+w2t (bf16) + w4 (f32), x2 buffers
    budget = max(int(vmem_budget * 0.75) - weight_bytes, 0)

    def fits(bb):
        per_step = bb * (T * H * enc_bytes + H * dec_bytes + H * out_bytes)
        return 2 * per_step <= budget              # inputs/outputs double-buffered

    def aligned(bb):
        return bb == B or bb % 8 == 0

    divisors = [d for d in range(1, B + 1) if B % d == 0]
    cands = [d for d in divisors if fits(d) and aligned(d)]
    if not cands:
        cands = [min(d for d in divisors if aligned(d))]   # smallest legal tile
    if num_cores >= 2:
        multi = [d for d in cands if B // d >= num_cores]
        if multi:
            return max(multi)
    return max(cands)


def attention_net(encoder_h, decoder_h, params, block_b=None):
    """Pallas forward of Attention_net.  Returns (1, B, H) like torch.
    `params` comes from prepare_attention_params (call once and reuse).
    encoder_h may be f32 or bf16 (bf16 halves the dominant HBM stream)."""
    B, T, H = encoder_h.shape
    w1t, w2t, w4 = params
    assert w1t.shape == (H, H) and w2t.shape == (H, H) and w4.shape == (1, H)

    # Flatten the size-1 decoder seq dim: (B, 1, H) -> (B, H).
    dec2 = decoder_h.reshape(B, H) if decoder_h.ndim == 3 else decoder_h
    assert dec2.shape == (B, H)

    vmem_budget, num_cores = _tpu_vmem_budget_and_cores()
    bb = block_b if block_b is not None else _pick_block_b(
        B, T, H,
        jnp.dtype(encoder_h.dtype).itemsize,
        jnp.dtype(dec2.dtype).itemsize,
        jnp.dtype(encoder_h.dtype).itemsize,
        vmem_budget, num_cores)
    assert B % bb == 0

    out = pl.pallas_call(
        attention_kernel,
        out_shape=jax.ShapeDtypeStruct((B, H), encoder_h.dtype),
        grid_spec=pltpu.PrefetchScalarGridSpec(
            num_scalar_prefetch=0,
            grid=(B // bb,),
            in_specs=[
                pl.BlockSpec((bb, T, H), lambda b: (b, 0, 0)),   # encoder_h
                pl.BlockSpec((bb, H), lambda b: (b, 0)),         # decoder_h (flattened)
                pl.BlockSpec((H, H), lambda b: (0, 0)),          # w1^T (bf16)
                pl.BlockSpec((H, H), lambda b: (0, 0)),          # w2^T (bf16)
                pl.BlockSpec((1, H), lambda b: (0, 0)),          # w4 (f32)
            ],
            out_specs=pl.BlockSpec((bb, H), lambda b: (b, 0)),
        ),
        compiler_params=pltpu.CompilerParams(
            dimension_semantics=("parallel",),
            vmem_limit_bytes=int(vmem_budget)),
    )(encoder_h, dec2, w1t, w2t, w4)

    # torch: (B, H).unsqueeze(0) -> (1, B, H)
    return out[None]


def attention_net_ref(encoder_h, decoder_h, w1, w2, w4):
    """Pure-JAX f32 reference mirroring the torch forward exactly."""
    out_s = encoder_h @ w1.T
    out_h = decoder_h @ w2.T
    t = jnp.tanh(out_h + out_s)
    score = t @ w4.T                         # (B, T, 1)
    weight = jax.nn.softmax(score, axis=1)   # softmax over dim=1
    out = jnp.sum(weight * encoder_h, axis=1)
    return out[None]


if __name__ == "__main__":
    B, T, H = 8, 16, 128  # H matches the module default input_ch=mid_out_ch=128

    key = jax.random.PRNGKey(0)
    k_enc, k_dec, k1, k2, k4 = jax.random.split(key, 5)

    # Deterministic weight init (PyTorch Linear-style uniform(-1/sqrt(in), 1/sqrt(in))).
    bound = 1.0 / jnp.sqrt(jnp.float32(H))
    w1 = jax.random.uniform(k1, (H, H), jnp.float32, -bound, bound)  # ln1.weight (out, in)
    w2 = jax.random.uniform(k2, (H, H), jnp.float32, -bound, bound)  # ln2.weight
    w4 = jax.random.uniform(k4, (1, H), jnp.float32, -bound, bound)  # ln4.weight

    encoder_h = jax.random.normal(k_enc, (B, T, H), jnp.float32)
    decoder_h = jax.random.normal(k_dec, (B, 1, H), jnp.float32)

    params = prepare_attention_params(w1, w2, w4)   # one-time, off the hot path
    ref = attention_net_ref(encoder_h, decoder_h, w1, w2, w4)

    # f32 encoder path.
    out = jax.block_until_ready(attention_net(encoder_h, decoder_h, params))
    assert out.shape == (1, B, H), out.shape
    # bf16 MXU operands + approx reciprocal -> relaxed tolerance vs the f32 ref.
    max_err = float(jnp.max(jnp.abs(out - ref)))
    assert jnp.allclose(out, ref, atol=2e-2, rtol=2e-2), max_err

    # bf16-streamed encoder path (halves HBM traffic; f32 accumulation inside).
    out_bf16 = jax.block_until_ready(
        attention_net(encoder_h.astype(jnp.bfloat16), decoder_h, params))
    max_err_bf16 = float(jnp.max(jnp.abs(out_bf16.astype(jnp.float32) - ref)))
    assert max_err_bf16 < 6e-2, max_err_bf16

    print("KERNEL_OK")
</pallas_src>

<mosaic_0001>
module attributes {stable_mosaic.version = 11 : i64} {
  func.func @attention_kernel(%arg0: i32, %arg1: memref<8x16x128xf32, #tpu.memory_space<vmem>>, %arg2: memref<8x128xf32, #tpu.memory_space<vmem>>, %arg3: memref<128x128xbf16, #tpu.memory_space<vmem>>, %arg4: memref<128x128xbf16, #tpu.memory_space<vmem>>, %arg5: memref<1x128xf32, #tpu.memory_space<vmem>>, %arg6: memref<8x128xf32, #tpu.memory_space<vmem>>) attributes {dimension_semantics = [#tpu.dimension_semantics<parallel>], iteration_bounds = array<i64: 1>, scalar_prefetch = 0 : i64, scratch_operands = 0 : i64, tpu.core_type = #tpu.core_type<tc>, window_params = [{transform_indices = @transform_0, window_bounds = array<i64: 8, 16, 128>}, {transform_indices = @transform_1, window_bounds = array<i64: 8, 128>}, {pipeline_mode = #tpu.pipeline_mode<synchronous>, transform_indices = @transform_2, window_bounds = array<i64: 128, 128>}, {pipeline_mode = #tpu.pipeline_mode<synchronous>, transform_indices = @transform_3, window_bounds = array<i64: 128, 128>}, {pipeline_mode = #tpu.pipeline_mode<synchronous>, transform_indices = @transform_4, window_bounds = array<i64: 1, 128>}, {transform_indices = @transform_5, window_bounds = array<i64: 8, 128>}]} {
    %c0 = arith.constant 0 : index
    %c0_0 = arith.constant 0 : index
    %c0_1 = arith.constant 0 : index
    %0 = vector.load %arg1[%c0, %c0_0, %c0_1] : memref<8x16x128xf32, #tpu.memory_space<vmem>>, vector<8x16x128xf32>
    %c0_2 = arith.constant 0 : index
    %c0_3 = arith.constant 0 : index
    %1 = vector.load %arg2[%c0_2, %c0_3] : memref<8x128xf32, #tpu.memory_space<vmem>>, vector<8x128xf32>
    %2 = arith.truncf %0 : vector<8x16x128xf32> to vector<8x16x128xbf16>
    %3 = vector.shape_cast %2 : vector<8x16x128xbf16> to vector<128x128xbf16>
    %c0_4 = arith.constant 0 : index
    %c0_5 = arith.constant 0 : index
    %4 = vector.load %arg3[%c0_4, %c0_5] : memref<128x128xbf16, #tpu.memory_space<vmem>>, vector<128x128xbf16>
    %cst = arith.constant dense<0.000000e+00> : vector<128x128xf32>
    %5 = tpu.matmul %3, %4, %cst {dimension_numbers = #tpu.dot_dimension_numbers<[1], [0], [0], [1], [0, 0, 1, 1], [], []>} : vector<128x128xbf16>, vector<128x128xbf16>, vector<128x128xf32> -> vector<128x128xf32>
    %6 = arith.truncf %1 : vector<8x128xf32> to vector<8x128xbf16>
    %c0_6 = arith.constant 0 : index
    %c0_7 = arith.constant 0 : index
    %7 = vector.load %arg4[%c0_6, %c0_7] : memref<128x128xbf16, #tpu.memory_space<vmem>>, vector<128x128xbf16>
    %cst_8 = arith.constant dense<0.000000e+00> : vector<8x128xf32>
    %8 = tpu.matmul %6, %7, %cst_8 {dimension_numbers = #tpu.dot_dimension_numbers<[1], [0], [0], [1], [0, 0, 1, 1], [], []>} : vector<8x128xbf16>, vector<128x128xbf16>, vector<8x128xf32> -> vector<8x128xf32>
    %9 = vector.shape_cast %5 : vector<128x128xf32> to vector<8x16x128xf32>
    %10 = vector.shape_cast %8 : vector<8x128xf32> to vector<8x1x128xf32>
    %11 = vector.broadcast %10 : vector<8x1x128xf32> to vector<8x16x128xf32>
    %12 = arith.addf %9, %11 : vector<8x16x128xf32>
    %13 = math.tanh %12 : vector<8x16x128xf32>
    %c0_9 = arith.constant 0 : index
    %c0_10 = arith.constant 0 : index
    %14 = vector.load %arg5[%c0_9, %c0_10] : memref<1x128xf32, #tpu.memory_space<vmem>>, vector<1x128xf32>
    %15 = vector.shape_cast %14 : vector<1x128xf32> to vector<1x1x128xf32>
    %16 = vector.broadcast %15 : vector<1x1x128xf32> to vector<8x16x128xf32>
    %17 = arith.mulf %13, %16 : vector<8x16x128xf32>
    %cst_11 = arith.constant dense<0.000000e+00> : vector<8x16xf32>
    %18 = vector.multi_reduction <add>, %17, %cst_11 [2] : vector<8x16x128xf32> to vector<8x16xf32>
    %cst_12 = arith.constant dense<0xFF800000> : vector<8xf32>
    %19 = vector.multi_reduction <maximumf>, %18, %cst_12 [1] : vector<8x16xf32> to vector<8xf32>
    %20 = vector.shape_cast %19 : vector<8xf32> to vector<8x1xf32>
    %21 = vector.broadcast %20 : vector<8x1xf32> to vector<8x16xf32>
    %22 = arith.subf %18, %21 : vector<8x16xf32>
    %23 = math.exp %22 : vector<8x16xf32>
    %cst_13 = arith.constant dense<0.000000e+00> : vector<8xf32>
    %24 = vector.multi_reduction <add>, %23, %cst_13 [1] : vector<8x16xf32> to vector<8xf32>
    %25 = vector.shape_cast %24 : vector<8xf32> to vector<8x1xf32>
    %26 = tpu.reciprocal %25 {approx = true} : vector<8x1xf32> -> vector<8x1xf32>
    %27 = vector.broadcast %26 : vector<8x1xf32> to vector<8x16xf32>
    %28 = arith.mulf %23, %27 : vector<8x16xf32>
    %29 = vector.shape_cast %28 : vector<8x16xf32> to vector<8x16x1xf32>
    %30 = vector.broadcast %29 : vector<8x16x1xf32> to vector<8x16x128xf32>
    %31 = arith.mulf %30, %0 : vector<8x16x128xf32>
    %cst_14 = arith.constant dense<0.000000e+00> : vector<8x128xf32>
    %32 = vector.multi_reduction <add>, %31, %cst_14 [1] : vector<8x16x128xf32> to vector<8x128xf32>
    %c0_15 = arith.constant 0 : index
    %c0_16 = arith.constant 0 : index
    %33 = vector.load %arg6[%c0_15, %c0_16] : memref<8x128xf32, #tpu.memory_space<vmem>>, vector<8x128xf32>
    tpu.vector_store %arg6[%c0_15, %c0_16], %32 {strides = array<i32>} : memref<8x128xf32, #tpu.memory_space<vmem>>, vector<8x128xf32>,
    return
  }
  func.func @transform_0(%arg0: i32) -> (i32, i32, i32) {
    %c0_i32 = arith.constant 0 : i32
    %c0_i32_0 = arith.constant 0 : i32
    %c0_i32_1 = arith.constant 0 : i32
    return %arg0, %c0_i32, %c0_i32_0 : i32, i32, i32
  }
  func.func @transform_1(%arg0: i32) -> (i32, i32) {
    %c0_i32 = arith.constant 0 : i32
    %c0_i32_0 = arith.constant 0 : i32
    return %arg0, %c0_i32 : i32, i32
  }
  func.func @transform_2(%arg0: i32) -> (i32, i32) {
    %c0_i32 = arith.constant 0 : i32
    %c0_i32_0 = arith.constant 0 : i32
    %c0_i32_1 = arith.constant 0 : i32
    return %c0_i32, %c0_i32_0 : i32, i32
  }
  func.func @transform_3(%arg0: i32) -> (i32, i32) {
    %c0_i32 = arith.constant 0 : i32
    %c0_i32_0 = arith.constant 0 : i32
    %c0_i32_1 = arith.constant 0 : i32
    return %c0_i32, %c0_i32_0 : i32, i32
  }
  func.func @transform_4(%arg0: i32) -> (i32, i32) {
    %c0_i32 = arith.constant 0 : i32
    %c0_i32_0 = arith.constant 0 : i32
    %c0_i32_1 = arith.constant 0 : i32
    return %c0_i32, %c0_i32_0 : i32, i32
  }
  func.func @transform_5(%arg0: i32) -> (i32, i32) {
    %c0_i32 = arith.constant 0 : i32
    %c0_i32_0 = arith.constant 0 : i32
    return %arg0, %c0_i32 : i32, i32
  }
}

</mosaic_0001>

<bundles_post_ra>
// kernel: tpu_custom_call.1
= control target key start
LH: loop header
LB: loop body
LE: loop exit
PB: predicated region body
PF: predicated region fallthrough
CT: control target
= control target key end

     0   :  { %10 = vsyncpa [#allocation3], 0  ;;  %s1838_s0 = inlined_call_operand.hbm [shape: f32[8,16,128], index: 0, kind: input, shape index: {}]   ;;  %s1839_s1 = inlined_call_operand.hbm [shape: f32[8,128], index: 1, kind: input, shape index: {}]   ;;  %s1840_s2 = inlined_call_operand.hbm [shape: bf16[128,128], index: 2, kind: input, shape index: {}]   ;;  %s1841_s3 = inlined_call_operand.hbm [shape: bf16[128,128], index: 3, kind: input, shape index: {}]   ;;  %s1842_s4 = inlined_call_operand.vmem [shape: f32[1,128], index: 4, kind: input, shape index: {}]   ;;  %s1843_s5 = inlined_call_operand.hbm [shape: f32[8,128], index: 5, kind: output, shape index: {}]  }
   0x1   :  { %11 = vsyncpa [#allocation6], 0 }
   0x2   :  { %12 = vsyncpa [#allocation9], 0 }
   0x3   :  { %13 = vsyncpa [#allocation4], 0  ;;  %s1433_s18 = smov [#allocation5]   ;;  %s1434_s20 = smov [#allocation2]  }
   0x4   :  { %s32_s19 = sshll.u32 %s1433_s18, 4  ;;  %s19_s21 = sshll.u32 %s1434_s20, 4  ;;  %s33_s19 = int_to_ptr.vmem [resolvable:$true] %s32_s19  ;;  %s20_s21 = int_to_ptr.vmem [resolvable:$true] %s19_s21 }
   0x5   :  { %s1333_s22 = scalar_lea.vmem %s33_s19, 128  ;;  %p1338_p1 = scmp.lt.s32.totalorder %s33_s19, %s33_s19 }
   0x6   :  { %p1334_p0 = scmp.ne.s32.totalorder %s33_s19, %s1333_s22  ;;  %p1339_p2 = scmp.lt.s32.totalorder %s1333_s22, %s1333_s22 }
   0x8   :  { %p1340_p3 = por %p1339_p2, %p1338_p1 }
   0xa   :  { %p1341_p4 = pnand %p1340_p3, %p1334_p0 }
   0xc   :  { %1344 = shalt.err (!%p1341_p4)
}
   0xd   :  { %35 = dma.hbm_to_vmem [thread:$0]  %s1839_s1, 128, %s33_s19, [#allocation6]  }
   0xe   :  { %s1353_s25 = scalar_lea.vmem %s20_s21, 2048  ;;  %p1358_p6 = scmp.lt.s32.totalorder %s20_s21, %s20_s21 }
   0xf   :  { %p1354_p5 = scmp.ne.s32.totalorder %s20_s21, %s1353_s25  ;;  %p1359_p7 = scmp.lt.s32.totalorder %s1353_s25, %s1353_s25 }
  0x11   :  { %p1360_p8 = por %p1359_p7, %p1358_p6 }
  0x13   :  { %p1361_p9 = pnand %p1360_p8, %p1354_p5 }
  0x15   :  { %1364 = shalt.err (!%p1361_p9)
}
  0x16   :  { %s1435_s26 = smov 128   ;;  %s1436_s27 = smov 8  }
  0x17   :  { %25 = dma.hbm_to_vmem [thread:$0]  %s1838_s0, 2048, %s20_s21, [#allocation3], %s1435_s26, %s1435_s26, %s1436_s27  }
  0x18   :  { %s1437_s30 = smov [#allocation7]  }
  0x19   :  { %s41_s6 = sshll.u32 %s1437_s30, 4  ;;  %s42_s6 = int_to_ptr.vmem [resolvable:$true] %s41_s6 }
  0x1a   :  { %s1373_s7 = scalar_lea.vmem %s42_s6, 1024  ;;  %p1378_p11 = scmp.lt.s32.totalorder %s42_s6, %s42_s6 }
  0x1b   :  { %p1374_p10 = scmp.ne.s32.totalorder %s42_s6, %s1373_s7  ;;  %p1379_p12 = scmp.lt.s32.totalorder %s1373_s7, %s1373_s7 }
  0x1d   :  { %p1380_p13 = por %p1379_p12, %p1378_p11 }
  0x1f   :  { %p1381_p0 = pnand %p1380_p13, %p1374_p10 }
  0x21   :  { %1384 = shalt.err (!%p1381_p0)
}
  0x22   :  { %s1438_s1 = smov 64   ;;  %s1439_s8 = smov 4  }
  0x23   :  { %47 = dma.hbm_to_vmem [thread:$0]  %s1840_s2, 1024, %s42_s6, [#allocation6], %s1438_s1, %s1438_s1, %s1439_s8  }
  0x24   :  { %s1440_s11 = smov [#allocation8]  }
  0x25   :  { %s53_s12 = sshll.u32 %s1440_s11, 4  ;;  %s54_s12 = int_to_ptr.vmem [resolvable:$true] %s53_s12 }
  0x26   :  { %s1393_s0 = scalar_lea.vmem %s54_s12, 1024  ;;  %p1398_p2 = scmp.lt.s32.totalorder %s54_s12, %s54_s12 }
  0x27   :  { %p1394_p1 = scmp.ne.s32.totalorder %s54_s12, %s1393_s0  ;;  %p1399_p3 = scmp.lt.s32.totalorder %s1393_s0, %s1393_s0 }
  0x29   :  { %p1400_p4 = por %p1399_p3, %p1398_p2 }
  0x2b   :  { %p1401_p5 = pnand %p1400_p4, %p1394_p1 }
  0x2d   :  { %1404 = shalt.err (!%p1401_p5)
}
  0x2e   :  { %59 = dma.hbm_to_vmem [thread:$0]  %s1841_s3, 1024, %s54_s12, [#allocation9], %s1438_s1, %s1438_s1, %s1439_s8  }
  0x2f   :  { %1425 = dma.done.wait [#allocation3], 2048  }
  0x30   :  { %1426 = vsyncadd [#allocation3], 4294965248 }
  0x31   :  { %1427 = dma.done.wait [#allocation6], 1152  }
  0x32   :  { %1428 = vsyncadd [#allocation6], 4294966144 }
  0x33   :  { %1429 = dma.done.wait [#allocation9], 1024  }
  0x34   :  { %1430 = vsyncadd [#allocation9], 4294966272  ;;  %v1441_v0 = vmov 0.0   ;;  %vm1442_vm0 = vmmov 0   ;;  %v1243_v1 = vld [vmem:[#allocation7 + $0x38] sm:$0xff]   ;;  %v1245_v3 = vld [vmem:[#allocation7 + $0x30] sm:$0xff]   ;;  %v371_v45 = vlaneseq }
  0x35   :  { %1208 = vmatprep.subr.bf16.mxu1 %v1441_v0  ;;  %1224 = vmatprep.mubr.msk.bf16.mxu1 %vm1442_vm0, %v1441_v0  ;;  %v1244_v2 = vld [vmem:[#allocation8 + $0x38] sm:$0xff]   ;;  %v1246_v4 = vld [vmem:[#allocation8 + $0x30] sm:$0xff]   ;;  %v1247_v5 = vld [vmem:[#allocation7 + $0x28] sm:$0xff]   ;;  %v1443_v43 = vmov 1966171168   ;;  %vm570_vm1 = vcmask 130112  }
  0x36   :  { %1176 = vmatprep.subr.bf16.mxu0 %v1243_v1  ;;  %1209 = vmatpush3.bf16.msra.mxu1 %v1244_v2  ;;  %v1248_v6 = vld [vmem:[#allocation8 + $0x28] sm:$0xff]   ;;  %v1249_v7 = vld [vmem:[#allocation7 + $0x20] sm:$0xff]   ;;  %v1251_v9 = vld [vmem:[#allocation7 + $0x18] sm:$0xff]   ;;  %v369_v44 = vunpack.c.l.s4 %v1443_v43  ;;  %v1537_v47 = vshrl.u32 %v371_v45, 7  ;;  %vm635_vm2 = vcmask 1041409   ;;  %vm637_vm3 = vcmask 1042434  }
  0x37   :  { %1177 = vmatpush3.bf16.msra.mxu0 %v1243_v1  ;;  %1210 = vmatprep.subr.bf16.mxu1 %v1441_v0  ;;  %v1250_v8 = vld [vmem:[#allocation8 + $0x20] sm:$0xff]   ;;  %v1252_v10 = vld [vmem:[#allocation8 + $0x18] sm:$0xff]   ;;  %v1253_v11 = vld [vmem:[#allocation7 + $0x10] sm:$0xff]   ;;  %vm639_vm4 = vcmask 1043459   ;;  %vm641_vm5 = vcmask 1044484   ;;  %vm643_vm6 = vcmask 1045509  }
  0x38   :  { %1178 = vmatprep.subr.bf16.mxu0 %v1245_v3  ;;  %v1488_v12 = vld [vmem:[#allocation2] sm:$0xff]  ;;  %v1490_v13 = vld [vmem:[#allocation2 + $0x8] sm:$0xff]  ;;  %v1254_v15 = vld [vmem:[#allocation8 + $0x10] sm:$0xff]   ;;  %v370_v46 = vunpack.c.0.s8 %v369_v44  ;;  %v1541_v53 = vsub.s32 0, %v1537_v47  ;;  %vm645_vm7 = vcmask 1046534   ;;  %vm647_vm8 = vcmask 1047559  }
  0x39   :  { %v92_v14 = vpack.c.bf16 %v1490_v13, %v1488_v12  ;;  %v1255_v16 = vld [vmem:[#allocation7 + $0x8] sm:$0xff]   ;;  %v1257_v18 = vld [vmem:[#allocation7] sm:$0xff]   ;;  %v91_v20 = vld [vmem:[#allocation5] sm:$0xff]  ;;  %vm650_vm9 = vcmask 130048  }
  0x3a   :  { %1211 = vmatpush3.bf16.msra.mxu1 %v1246_v4  ;;  %v1256_v17 = vld [vmem:[#allocation8 + $0x8] sm:$0xff]   ;;  %v1258_v19 = vld [vmem:[#allocation8] sm:$0xff]   ;;  %v1496_v22 = vld [vmem:[#allocation2 + $0x18] sm:$0xff]  ;;  %v261_v25 = vpack.c.bf16 %v91_v20, %v91_v20  ;;  %v373_v48 = vsub.s32 %v370_v46, %v1537_v47 }
  0x3b   :  { %1179 = vmatpush3.bf16.msra.mxu0 %v1245_v3  ;;  %1212 = vmatprep.subr.bf16.mxu1 %v1441_v0  ;;  %v1494_v21 = vld [vmem:[#allocation2 + $0x10] sm:$0xff]  ;;  %v1498_v23 = vld [vmem:[#allocation2 + $0x20] sm:$0xff]  ;;  %v1500_v24 = vld [vmem:[#allocation2 + $0x28] sm:$0xff] }
  0x3c   :  { %1180 = vmatprep.subr.bf16.mxu0 %v1247_v5  ;;  %1192 = vmatprep.mubr.bf16.mxu0 %v92_v14  ;;  %v93_v26 = vpack.c.bf16 %v1496_v22, %v1494_v21  ;;  %v94_v27 = vpack.c.bf16 %v1500_v24, %v1498_v23  ;;  %v1506_v28 = vld [vmem:[#allocation2 + $0x30] sm:$0xff]  ;;  %v1508_v29 = vld [vmem:[#allocation2 + $0x38] sm:$0xff]  ;;  %v1510_v30 = vld [vmem:[#allocation2 + $0x40] sm:$0xff] }
  0x3d   :  { %v1512_v31 = vld [vmem:[#allocation2 + $0x48] sm:$0xff]  ;;  %v95_v32 = vpack.c.bf16 %v1508_v29, %v1506_v28  ;;  %v1518_v34 = vld [vmem:[#allocation2 + $0x50] sm:$0xff]  ;;  %v1520_v35 = vld [vmem:[#allocation2 + $0x58] sm:$0xff] }
  0x3e   :  { %1213 = vmatpush3.bf16.msra.mxu1 %v1248_v6  ;;  %v96_v33 = vpack.c.bf16 %v1512_v31, %v1510_v30  ;;  %v1522_v36 = vld [vmem:[#allocation2 + $0x60] sm:$0xff]  ;;  %v1524_v37 = vld [vmem:[#allocation2 + $0x68] sm:$0xff]  ;;  %v97_v38 = vpack.c.bf16 %v1520_v35, %v1518_v34  ;;  %v1530_v40 = vld [vmem:[#allocation2 + $0x70] sm:$0xff] }
  0x3f   :  { %1181 = vmatpush3.bf16.msra.mxu0 %v1247_v5  ;;  %1214 = vmatprep.subr.bf16.mxu1 %v1441_v0  ;;  %v98_v39 = vpack.c.bf16 %v1524_v37, %v1522_v36  ;;  %v1532_v41 = vld [vmem:[#allocation2 + $0x78] sm:$0xff] }
  0x40   :  { %1182 = vmatprep.subr.bf16.mxu0 %v1249_v7  ;;  %v99_v42 = vpack.c.bf16 %v1532_v41, %v1530_v40 }
  0x42   :  { %1215 = vmatpush3.bf16.msra.mxu1 %v1250_v8 }
  0x43   :  { %1183 = vmatpush3.bf16.msra.mxu0 %v1249_v7  ;;  %1216 = vmatprep.subr.bf16.mxu1 %v1441_v0 }
  0x44   :  { %1184 = vmatprep.subr.bf16.mxu0 %v1251_v9 }
  0x46   :  { %1217 = vmatpush3.bf16.msra.mxu1 %v1252_v10 }
  0x47   :  { %1185 = vmatpush3.bf16.msra.mxu0 %v1251_v9  ;;  %1218 = vmatprep.subr.bf16.mxu1 %v1441_v0 }
  0x48   :  { %1186 = vmatprep.subr.bf16.mxu0 %v1253_v11 }
  0x4a   :  { %1219 = vmatpush3.bf16.msra.mxu1 %v1254_v15 }
  0x4b   :  { %1187 = vmatpush3.bf16.msra.mxu0 %v1253_v11  ;;  %1220 = vmatprep.subr.bf16.mxu1 %v1441_v0 }
  0x4c   :  { %1188 = vmatprep.subr.bf16.mxu0 %v1255_v16 }
  0x4e   :  { %1221 = vmatpush3.bf16.msra.mxu1 %v1256_v17 }
  0x4f   :  { %1189 = vmatpush3.bf16.msra.mxu0 %v1255_v16  ;;  %1222 = vmatprep.subr.bf16.mxu1 %v1441_v0 }
  0x50   :  { %1190 = vmatprep.subr.bf16.mxu0 %v1257_v18 }
  0x52   :  { %1223 = vmatpush3.bf16.msra.mxu1 %v1258_v19 }
  0x53   :  { %1191 = vmatpush3.bf16.msra.mxu0 %v1257_v18 }
  0x55   :  { %1225 = vmatmul.mubr.bf16.vlgmr.msra.gmra.mxu1 %v261_v25 }
  0x56   :  { %1193 = vmatmul.mubr.bf16.vlgmr.msra.gmra.mxu0 %v93_v26 }
  0x57   :  { %1196 = vmatprep.mubr.bf16.mxu0 %v94_v27 }
  0x5e   :  { %1197 = vmatmul.mubr.bf16.gmra.mxu0 %v95_v32 }
  0x5f   :  { %1200 = vmatprep.mubr.bf16.mxu0 %v96_v33 }
  0x66   :  { %1201 = vmatmul.mubr.bf16.gmra.mxu0 %v97_v38 }
  0x67   :  { %1204 = vmatprep.mubr.bf16.mxu0 %v98_v39 }
  0x6e   :  { %1205 = vmatmul.mubr.bf16.gmra.mxu0 %v99_v42  ;;  %v1551_v42 = vld [vmem:[%s1842_s4] ss:$0 sm:$0xff]  ;;  %s1445_s4 = smov [#allocation10]  }
  0x6f   :  { %s1123_s15 = sshll.u32 %s1445_s4, 4  ;;  %s1124_s15 = int_to_ptr.vmem [resolvable:$true] %s1123_s15 }
  0x70   :  { %s1405_s16 = scalar_lea.vmem %s1124_s15, 128  ;;  %p1410_p7 = scmp.lt.s32.totalorder %s1124_s15, %s1124_s15 }
  0x71   :  { %p1406_p6 = scmp.ne.s32.totalorder %s1124_s15, %s1405_s16  ;;  %p1411_p8 = scmp.lt.s32.totalorder %s1405_s16, %s1405_s16 }
  0x73   :  { %p1412_p9 = por %p1411_p8, %p1410_p7 }
  0x75   :  { %p1413_p10 = pnand %p1412_p9, %p1406_p6 }
 0x115   :  { %v360_v49 = vpop.f32.mrf.mxu1 }
 0x116   :  { %v1194_v50 = vpop.f32.mrf.mxu0  ;;  %v367_v51 = vcombine.high %v360_v49, %v360_v49  ;;  %v374_v52 = vrot.slane %v360_v49, %v373_v48 }
 0x117   :  { %v1226_v54 = vpop.f32.mrf.mxu1 }
 0x118   :  { %v198_v55 = vpop.f32.mrf.mxu0  ;;  %v382_v56 = vcombine.high %v374_v52, %v374_v52  ;;  %v390_v57 = vrot.slane %v374_v52, %v373_v48  ;;  %v381_v58 = vrot.slane %v367_v51, %v373_v48 }
 0x119   :  { %v363_v59 = vpop.f32.mrf.mxu1 }
 0x11a   :  { %v1195_v60 = vpop.f32.mrf.mxu0  ;;  %v404_v61 = vrot.slane %v382_v56, %v373_v48  ;;  %v419_v62 = vrot.slane %v390_v57, %v1541_v53  ;;  %v383_v5 = vcombine.high %v381_v58, %v381_v58  ;;  %v412_v7 = vcombine.high %v390_v57, %v390_v57 }
 0x11b   :  { %v1227_v63 = vpop.f32.mrf.mxu1  ;;  %v397_v32 = vrot.slane %v381_v58, %v373_v48 }
 0x11c   :  { %v201_v0 = vpop.f32.mrf.mxu0  ;;  %v423_v1 = vrot.slane %v404_v61, %v1541_v53  ;;  %v456_v2 = vadd.f32 %v419_v62, %v198_v55  ;;  %v414_v4 = vcombine.high %v404_v61, %v404_v61  ;;  %v427_v16 = vrot.slane %v412_v7, %v1541_v53 }
 0x11d   :  { %v457_v3 = vadd.f32 %v419_v62, %v201_v0  ;;  %v411_v18 = vrot.slane %v383_v5, %v373_v48  ;;  %v435_v43 = vrot.slane %v397_v32, %v1541_v53  ;;  %v413_v46 = vcombine.high %v397_v32, %v397_v32 }
 0x11e   :  { %v1198_v6 = vpop.f32.mrf.mxu0  ;;  %v458_v8 = vadd.f32 %v1194_v50, %v423_v1  ;;  %1259 = vtanh.f32 %v456_v2  ;;  %v459_v9 = vadd.f32 %v1195_v60, %v423_v1  ;;  %v431_v10 = vrot.slane %v414_v4, %v1541_v53 }
 0x11f   :  { %1261 = vtanh.f32 %v457_v3  ;;  %v439_v27 = vrot.slane %v411_v18, %v1541_v53  ;;  %v415_v56 = vcombine.high %v411_v18, %v411_v18  ;;  %v443_v59 = vrot.slane %v413_v46, %v1541_v53 }
 0x120   :  { %v214_v11 = vpop.f32.mrf.mxu0  ;;  %1263 = vtanh.f32 %v458_v8  ;;  %v462_v14 = vadd.f32 %v1198_v6, %v431_v10 }
 0x121   :  { %1265 = vtanh.f32 %v459_v9  ;;  %v460_v20 = vadd.f32 %v427_v16, %v214_v11  ;;  %v447_v2 = vrot.slane %v415_v56, %v1541_v53  ;;  %v560_v56 = vand.u32 127, %v371_v45 }
 0x122   :  { %v1199_v15 = vpop.f32.mrf.mxu0  ;;  %1267 = vtanh.f32 %v462_v14 }
 0x123   :  { %v463_v17 = vadd.f32 %v1199_v15, %v431_v10 }
 0x124   :  { %v217_v19 = vpop.f32.mrf.mxu0 }
 0x125   :  { %1269 = vtanh.f32 %v463_v17  ;;  %v461_v26 = vadd.f32 %v427_v16, %v217_v19 }
 0x126   :  { %v1202_v25 = vpop.f32.mrf.mxu0  ;;  %1271 = vtanh.f32 %v460_v20 }
 0x127   :  { %v466_v38 = vadd.f32 %v1202_v25, %v439_v27  ;;  %1273 = vtanh.f32 %v461_v26 }
 0x128   :  { %v230_v33 = vpop.f32.mrf.mxu0 }
 0x129   :  { %1275 = vtanh.f32 %v466_v38  ;;  %v464_v52 = vadd.f32 %v435_v43, %v230_v33 }
 0x12a   :  { %v1203_v39 = vpop.f32.mrf.mxu0 }
 0x12b   :  { %v467_v44 = vadd.f32 %v1203_v39, %v439_v27  ;;  %v1260_v49 = vpop.eup %1259 }
 0x12c   :  { %v233_v50 = vpop.f32.mrf.mxu0  ;;  %v1262_v51 = vpop.eup %1261  ;;  %v495_v48 = vmul.f32 %v1260_v49, %v1551_v42 }
 0x12d   :  { %v1264_v54 = vpop.eup %1263  ;;  %1277 = vtanh.f32 %v467_v44  ;;  %v465_v57 = vadd.f32 %v435_v43, %v233_v50  ;;  %v496_v63 = vmul.f32 %v1262_v51, %v1551_v42 }
 0x12e   :  { %v1206_v55 = vpop.f32.mrf.mxu0  ;;  %511 = vadd.xlane.f32.xlu0 %v495_v48  ;;  %v497_v58 = vmul.f32 %v1264_v54, %v1551_v42  ;;  %v1266_v60 = vpop.eup %1265  ;;  %1279 = vtanh.f32 %v464_v52 }
 0x12f   :  { %v1268_v0 = vpop.eup %1267  ;;  %1281 = vtanh.f32 %v465_v57  ;;  %v498_v3 = vmul.f32 %v1266_v60, %v1551_v42  ;;  %v470_v6 = vadd.f32 %v1206_v55, %v447_v2 }
 0x130   :  { %v246_v61 = vpop.f32.mrf.mxu0  ;;  %515 = vadd.xlane.f32.xlu1 %v497_v58  ;;  %v501_v8 = vmul.f32 %v1268_v0, %v1551_v42  ;;  %v565_v58 = vadd.s32 4294967288, %v560_v56 }
 0x131   :  { %v468_v62 = vadd.f32 %v443_v59, %v246_v61 }
 0x132   :  { %v1207_v1 = vpop.f32.mrf.mxu0  ;;  %513 = vadd.xlane.f32.xlu0 %v496_v63  ;;  %v1270_v4 = vpop.eup %1269 }
 0x133   :  { %1283 = vtanh.f32 %v468_v62  ;;  %v1272_v9 = vpop.eup %1271  ;;  %v471_v10 = vadd.f32 %v1207_v1, %v447_v2  ;;  %v502_v11 = vmul.f32 %v1270_v4, %v1551_v42  ;;  %v1595_v62 = vsub.s32 %v560_v56, %v1537_v47 }
 0x134   :  { %v249_v5 = vpop.f32.mrf.mxu0  ;;  %517 = vadd.xlane.f32.xlu1 %v498_v3  ;;  %v1274_v14 = vpop.eup %1273  ;;  %v499_v15 = vmul.f32 %v1272_v9, %v1551_v42 }
 0x135   :  { %v469_v7 = vadd.f32 %v443_v59, %v249_v5  ;;  %v500_v17 = vmul.f32 %v1274_v14, %v1551_v42 }
 0x136   :  { %523 = vadd.xlane.f32.xlu0 %v501_v8  ;;  %v1276_v16 = vpop.eup %1275 }
 0x137   :  { %1285 = vtanh.f32 %v469_v7  ;;  %v505_v19 = vmul.f32 %v1276_v16, %v1551_v42 }
 0x138   :  { %1287 = vtanh.f32 %v470_v6  ;;  %525 = vadd.xlane.f32.xlu1 %v502_v11 }
 0x139   :  { %1289 = vtanh.f32 %v471_v10 }
 0x13a   :  { %519 = vadd.xlane.f32.xlu0 %v499_v15  ;;  %v1278_v18 = vpop.eup %1277 }
 0x13b   :  { %v1280_v20 = vpop.eup %1279  ;;  %v506_v25 = vmul.f32 %v1278_v18, %v1551_v42 }
 0x13c   :  { %521 = vadd.xlane.f32.xlu1 %v500_v17  ;;  %v1282_v26 = vpop.eup %1281  ;;  %v503_v27 = vmul.f32 %v1280_v20, %v1551_v42 }
 0x13d   :  { %v504_v33 = vmul.f32 %v1282_v26, %v1551_v42 }
 0x13e   :  { %531 = vadd.xlane.f32.xlu0 %v505_v19 }
 0x140   :  { %533 = vadd.xlane.f32.xlu1 %v506_v25  ;;  %v1284_v32 = vpop.eup %1283 }
 0x141   :  { %v507_v39 = vmul.f32 %v1284_v32, %v1551_v42 }
 0x142   :  { %527 = vadd.xlane.f32.xlu0 %v503_v27 }
 0x144   :  { %v1286_v38 = vpop.eup %1285  ;;  %529 = vadd.xlane.f32.xlu1 %v504_v33 }
 0x145   :  { %v508_v43 = vmul.f32 %v1286_v38, %v1551_v42  ;;  %v1288_v44 = vpop.eup %1287 }
 0x146   :  { %535 = vadd.xlane.f32.xlu0 %v507_v39  ;;  %v1290_v46 = vpop.eup %1289  ;;  %v509_v49 = vmul.f32 %v1288_v44, %v1551_v42 }
 0x147   :  { %v510_v50 = vmul.f32 %v1290_v46, %v1551_v42  ;;  %v1590_v42 = vsub.s32 %v565_v58, %v1537_v47 }
 0x148   :  { %537 = vadd.xlane.f32.xlu1 %v508_v43 }
 0x14a   :  { %539 = vadd.xlane.f32.xlu0 %v509_v49 }
 0x14c   :  { %541 = vadd.xlane.f32.xlu1 %v510_v50 }
 0x1b7   :  { %v1572_v51 = vpop.xlane.xlu0 %511 }
 0x1b8   :  { %v564_v5 = vrot.slane %v1572_v51, %v1595_v62 }
 0x1b9   :  { %v1574_v52 = vpop.xlane.xlu1 %515 }
 0x1ba   :  { %v575_v1 = vrot.slane %v1574_v52, %v1595_v62 }
 0x1bb   :  { %v1576_v48 = vpop.xlane.xlu0 %513 }
 0x1bc   :  { %v569_v2 = vrot.slane %v1576_v48, %v1590_v42 }
 0x1bd   :  { %v1578_v54 = vpop.xlane.xlu1 %517 }
 0x1be   :  { %v579_v63 = vrot.slane %v1578_v54, %v1590_v42  ;;  %v571_v9 = vsel %vm570_vm1, %v569_v2, %v564_v5  ;;  %v661_v5 = vsub.s32 1, %v1537_v47 }
 0x1bf   :  { %v1580_v55 = vpop.xlane.xlu0 %523 }
 0x1c0   :  { %v580_v6 = vsel %vm570_vm1, %v579_v63, %v575_v1  ;;  %v593_v17 = vrot.slane %v1580_v55, %v1595_v62 }
 0x1c1   :  { %v1583_v57 = vpop.xlane.xlu1 %525  ;;  %v636_v14 = vsel %vm635_vm2, %v580_v6, %v571_v9 }
 0x1c2   :  { %v597_v10 = vrot.slane %v1583_v57, %v1590_v42 }
 0x1c3   :  { %v1585_v59 = vpop.xlane.xlu0 %519 }
 0x1c4   :  { %v584_v3 = vrot.slane %v1585_v59, %v1595_v62  ;;  %v598_v25 = vsel %vm570_vm1, %v597_v10, %v593_v17  ;;  %v1845_v10 = vsub.s32 5, %v1537_v47 }
 0x1c5   :  { %v1587_v60 = vpop.xlane.xlu1 %521 }
 0x1c6   :  { %v588_v45 = vrot.slane %v1587_v60, %v1590_v42 }
 0x1c7   :  { %v1592_v61 = vpop.xlane.xlu0 %531 }
 0x1c8   :  { %v589_v7 = vsel %vm570_vm1, %v588_v45, %v584_v3  ;;  %v611_v39 = vrot.slane %v1592_v61, %v1595_v62  ;;  %v1444_v3 = vmov 0  }
 0x1c9   :  { %v1601_v0 = vpop.xlane.xlu1 %533  ;;  %v638_v18 = vsel %vm637_vm3, %v589_v7, %v636_v14  ;;  %1242 = vset.pattern.permute.xlu0 %v1444_v3  ;;  %1241 = vset.pattern.permute.xlu1 %v1444_v3 }
 0x1ca   :  { %v615_v26 = vrot.slane %v1601_v0, %v1590_v42  ;;  %v640_v38 = vsel %vm639_vm4, %v598_v25, %v638_v18  ;;  %v1844_v18 = vsub.s32 6, %v1537_v47 }
 0x1cb   :  { %v1609_v4 = vpop.xlane.xlu0 %527 }
 0x1cc   :  { %v602_v15 = vrot.slane %v1609_v4, %v1595_v62  ;;  %v616_v49 = vsel %vm570_vm1, %v615_v26, %v611_v39  ;;  %v1846_v39 = vsub.s32 3, %v1537_v47 }
 0x1cd   :  { %v1615_v8 = vpop.xlane.xlu1 %529 }
 0x1ce   :  { %v606_v11 = vrot.slane %v1615_v8, %v1590_v42 }
 0x1cf   :  { %v1625_v16 = vpop.xlane.xlu0 %535 }
 0x1d0   :  { %v607_v19 = vsel %vm570_vm1, %v606_v11, %v602_v15  ;;  %v620_v32 = vrot.slane %v1625_v16, %v1595_v62  ;;  %v665_v15 = vsub.s32 2, %v1537_v47 }
 0x1d1   :  { %v1631_v20 = vpop.xlane.xlu1 %537  ;;  %v642_v43 = vsel %vm641_vm5, %v607_v19, %v640_v38 }
 0x1d2   :  { %v624_v27 = vrot.slane %v1631_v20, %v1590_v42  ;;  %v644_v58 = vsel %vm643_vm6, %v616_v49, %v642_v43 }
 0x1d3   :  { %v1640_v33 = vpop.xlane.xlu0 %539 }
 0x1d4   :  { %v625_v46 = vsel %vm570_vm1, %v624_v27, %v620_v32  ;;  %v629_v50 = vrot.slane %v1640_v33, %v1595_v62 }
 0x1d5   :  { %v1646_v44 = vpop.xlane.xlu1 %541  ;;  %v646_v45 = vsel %vm645_vm7, %v625_v46, %v644_v58 }
 0x1d6   :  { %v633_v56 = vrot.slane %v1646_v44, %v1590_v42 }
 0x1d8   :  { %v634_v63 = vsel %vm570_vm1, %v633_v56, %v629_v50 }
 0x1d9   :  { %v648_v1 = vsel %vm647_vm8, %v634_v63, %v646_v45 }
 0x1da   :  { %v651_v2 = vsel %vm650_vm9, %v648_v1, -inf }
 0x1db   :  { %652 = vmax.xlane.f32.xlu0 %v651_v2 }
 0x264   :  { %v653_v6 = vpop.xlane.xlu0 %652 }
 0x265   :  { %v658_v7 = vrot.slane %v653_v6, %v1541_v53  ;;  %v662_v9 = vrot.slane %v653_v6, %v661_v5  ;;  %v1671_v19 = vrot.slane %v653_v6, %v1845_v10  ;;  %v666_v27 = vrot.slane %v653_v6, %v665_v15 }
 0x266   :  { %v670_v56 = vrot.slane %v653_v6, %v1846_v39 }
 0x267   :  { %v695_v11 = vsub.f32 %v1572_v51, %v658_v7  ;;  %v696_v14 = vsub.f32 %v1576_v48, %v658_v7  ;;  %v697_v17 = vsub.f32 %v1574_v52, %v662_v9  ;;  %v698_v32 = vsub.f32 %v1578_v54, %v662_v9 }
 0x268   :  { %v685_v48 = vsub.s32 7, %v1537_v47  ;;  %v682_v52 = vrot.slane %v653_v6, %v1844_v18  ;;  %v705_v38 = vsub.f32 %v1592_v61, %v1671_v19  ;;  %v699_v43 = vsub.f32 %v1585_v59, %v666_v27 }
 0x269   :  { %v711_v25 = vmul.f32 1.442695, %v695_v11  ;;  %v713_v26 = vmul.f32 1.442695, %v696_v14  ;;  %v715_v51 = vmul.f32 1.442695, %v697_v17  ;;  %v700_v58 = vsub.f32 %v1587_v60, %v666_v27 }
 0x26a   :  { %v717_v46 = vmul.f32 1.442695, %v698_v32  ;;  %v686_v54 = vrot.slane %v653_v6, %v685_v48  ;;  %v707_v49 = vsub.f32 %v1625_v16, %v682_v52  ;;  %v731_v50 = vmul.f32 1.442695, %v705_v38 }
 0x26b   :  { %1291 = vpow2.f32 %v711_v25  ;;  %v719_v63 = vmul.f32 1.442695, %v699_v43  ;;  %v673_v59 = vsub.s32 4, %v1537_v47  ;;  %v701_v1 = vsub.f32 %v1580_v55, %v670_v56 }
 0x26c   :  { %1293 = vpow2.f32 %v713_v26  ;;  %v709_v61 = vsub.f32 %v1640_v33, %v686_v54  ;;  %v735_v45 = vmul.f32 1.442695, %v707_v49  ;;  %v721_v2 = vmul.f32 1.442695, %v700_v58 }
 0x26d   :  { %1295 = vpow2.f32 %v715_v51  ;;  %v674_v60 = vrot.slane %v653_v6, %v673_v59  ;;  %v702_v33 = vsub.f32 %v1583_v57, %v670_v56  ;;  %v723_v9 = vmul.f32 1.442695, %v701_v1 }
 0x26e   :  { %1297 = vpow2.f32 %v717_v46  ;;  %v739_v7 = vmul.f32 1.442695, %v709_v61  ;;  %v708_v38 = vsub.f32 %v1631_v20, %v682_v52 }
 0x26f   :  { %1299 = vpow2.f32 %v731_v50  ;;  %v703_v11 = vsub.f32 %v1609_v4, %v674_v60  ;;  %v725_v14 = vmul.f32 1.442695, %v702_v33  ;;  %v704_v6 = vsub.f32 %v1615_v8, %v674_v60 }
 0x270   :  { %1301 = vpow2.f32 %v719_v63  ;;  %v706_v4 = vsub.f32 %v1601_v0, %v1671_v19  ;;  %v710_v0 = vsub.f32 %v1646_v44, %v686_v54  ;;  %v737_v19 = vmul.f32 1.442695, %v708_v38 }
 0x271   :  { %1303 = vpow2.f32 %v735_v45  ;;  %v727_v57 = vmul.f32 1.442695, %v703_v11  ;;  %v729_v32 = vmul.f32 1.442695, %v704_v6 }
 0x272   :  { %1305 = vpow2.f32 %v721_v2  ;;  %v733_v43 = vmul.f32 1.442695, %v706_v4  ;;  %v741_v50 = vmul.f32 1.442695, %v710_v0 }
 0x273   :  { %1307 = vpow2.f32 %v739_v7 }
 0x274   :  { %1309 = vpow2.f32 %v723_v9 }
 0x275   :  { %1311 = vpow2.f32 %v725_v14 }
 0x276   :  { %1313 = vpow2.f32 %v727_v57 }
 0x277   :  { %1315 = vpow2.f32 %v729_v32 }
 0x278   :  { %v1692_v3 = vpop.eup %1291  ;;  %1317 = vpow2.f32 %v733_v43 }
 0x279   :  { %v1694_v16 = vpop.eup %1293  ;;  %760 = vperm.xlu1 %1241, %v1692_v3   ;;  %1319 = vpow2.f32 %v737_v19 }
 0x27a   :  { %763 = vperm.xlu0 %1242, %v1694_v16   ;;  %v1701_v55 = vpop.eup %1295  ;;  %1321 = vpow2.f32 %v741_v50 }
 0x27b   :  { %v1705_v17 = vpop.eup %1297 }
 0x27c   :  { %v1708_v25 = vpop.eup %1299 }
 0x27d   :  { %766 = vperm.xlu1 %1241, %v1701_v55   ;;  %v1712_v26 = vpop.eup %1301 }
 0x27e   :  { %790 = vperm.xlu0 %1242, %v1708_v25   ;;  %v1715_v27 = vpop.eup %1303 }
 0x27f   :  { %v1720_v51 = vpop.eup %1305 }
 0x280   :  { %v1723_v8 = vpop.eup %1307 }
 0x281   :  { %769 = vperm.xlu1 %1241, %v1705_v17   ;;  %v1727_v46 = vpop.eup %1309 }
 0x282   :  { %796 = vperm.xlu0 %1242, %v1715_v27   ;;  %v1731_v49 = vpop.eup %1311 }
 0x283   :  { %v1734_v56 = vpop.eup %1313 }
 0x284   :  { %v1737_v20 = vpop.eup %1315 }
 0x285   :  { %772 = vperm.xlu1 %1241, %v1712_v26   ;;  %v1740_v52 = vpop.eup %1317 }
 0x286   :  { %802 = vperm.xlu0 %1242, %v1723_v8   ;;  %v1743_v44 = vpop.eup %1319 }
 0x287   :  { %v1746_v54 = vpop.eup %1321 }
 0x289   :  { %775 = vperm.xlu1 %1241, %v1720_v51  }
 0x28d   :  { %778 = vperm.xlu1 %1241, %v1727_v46  }
 0x291   :  { %781 = vperm.xlu1 %1241, %v1731_v49  }
 0x295   :  { %784 = vperm.xlu1 %1241, %v1734_v56  }
 0x299   :  { %787 = vperm.xlu1 %1241, %v1737_v20  }
 0x29d   :  { %793 = vperm.xlu1 %1241, %v1740_v52  }
 0x2a1   :  { %799 = vperm.xlu1 %1241, %v1743_v44  }
 0x2a5   :  { %805 = vperm.xlu1 %1241, %v1746_v54  }
 0x2f4   :  { %v761_v58 = vpop.permute.xlu1 %760 }
 0x2f5   :  { %v764_v7 = vpop.permute.xlu0 %763  ;;  %v810_v38 = vrot.slane %v761_v58, %v1595_v62 }
 0x2f6   :  { %v814_v32 = vrot.slane %v764_v7, %v1590_v42 }
 0x2f8   :  { %v767_v63 = vpop.permute.xlu1 %766  ;;  %v815_v58 = vsel %vm570_vm1, %v814_v32, %v810_v38 }
 0x2f9   :  { %v791_v9 = vpop.permute.xlu0 %790  ;;  %v819_v43 = vrot.slane %v767_v63, %v1595_v62 }
 0x2fa   :  { %v855_v63 = vrot.slane %v791_v9, %v1595_v62 }
 0x2fc   :  { %v770_v61 = vpop.permute.xlu1 %769 }
 0x2fd   :  { %v823_v14 = vrot.slane %v770_v61, %v1590_v42  ;;  %v797_v6 = vpop.permute.xlu0 %796 }
 0x2ff   :  { %v824_v18 = vsel %vm570_vm1, %v823_v14, %v819_v43 }
 0x300   :  { %v773_v45 = vpop.permute.xlu1 %772  ;;  %v879_v14 = vsel %vm635_vm2, %v824_v18, %v815_v58 }
 0x301   :  { %v828_v19 = vrot.slane %v773_v45, %v1595_v62 }
 0x304   :  { %v776_v1 = vpop.permute.xlu1 %775 }
 0x305   :  { %v832_v57 = vrot.slane %v776_v1, %v1590_v42 }
 0x307   :  { %v833_v1 = vsel %vm570_vm1, %v832_v57, %v828_v19 }
 0x308   :  { %v779_v2 = vpop.permute.xlu1 %778  ;;  %v880_v57 = vsel %vm637_vm3, %v833_v1, %v879_v14 }
 0x309   :  { %v837_v61 = vrot.slane %v779_v2, %v1595_v62  ;;  %v803_v2 = vpop.permute.xlu0 %802 }
 0x30a   :  { %v873_v38 = vrot.slane %v803_v2, %v1595_v62  ;;  %v1849_v2 = vsub.s32 6, %v1537_v47 }
 0x30c   :  { %v782_v60 = vpop.permute.xlu1 %781 }
 0x30d   :  { %v841_v0 = vrot.slane %v782_v60, %v1590_v42 }
 0x30f   :  { %v842_v60 = vsel %vm570_vm1, %v841_v0, %v837_v61 }
 0x310   :  { %v785_v33 = vpop.permute.xlu1 %784  ;;  %v881_v43 = vsel %vm639_vm4, %v842_v60, %v880_v57 }
 0x311   :  { %v846_v7 = vrot.slane %v785_v33, %v1595_v62 }
 0x314   :  { %v788_v11 = vpop.permute.xlu1 %787 }
 0x315   :  { %v850_v50 = vrot.slane %v788_v11, %v1590_v42  ;;  %v864_v11 = vrot.slane %v797_v6, %v1595_v62 }
 0x318   :  { %v794_v4 = vpop.permute.xlu1 %793 }
 0x319   :  { %v859_v10 = vrot.slane %v794_v4, %v1590_v42  ;;  %v851_v4 = vsel %vm570_vm1, %v850_v50, %v846_v7 }
 0x31b   :  { %v860_v33 = vsel %vm570_vm1, %v859_v10, %v855_v63 }
 0x31c   :  { %v800_v39 = vpop.permute.xlu1 %799 }
 0x31d   :  { %v868_v45 = vrot.slane %v800_v39, %v1590_v42  ;;  %v882_v39 = vsel %vm641_vm5, %v851_v4, %v881_v43 }
 0x31e   :  { %v883_v18 = vsel %vm643_vm6, %v860_v33, %v882_v39 }
 0x31f   :  { %v869_v32 = vsel %vm570_vm1, %v868_v45, %v864_v11 }
 0x320   :  { %v806_v9 = vpop.permute.xlu1 %805  ;;  %v884_v19 = vsel %vm645_vm7, %v869_v32, %v883_v18 }
 0x321   :  { %v877_v6 = vrot.slane %v806_v9, %v1590_v42 }
 0x323   :  { %v878_v0 = vsel %vm570_vm1, %v877_v6, %v873_v38 }
 0x324   :  { %v885_v50 = vsel %vm647_vm8, %v878_v0, %v884_v19 }
 0x325   :  { %v887_v10 = vsel %vm650_vm9, %v885_v50, 0.0 }
 0x326   :  { %888 = vadd.xlane.f32.xlu0 %v887_v10 }
 0x3af   :  { %v889_v61 = vpop.xlane.xlu0 %888 }
 0x3b0   :  { %1323 = vrcp.f32 %v889_v61 }
 0x3bd   :  { %v1324_v1 = vpop.eup %1323 }
 0x3be   :  { %v911_v62 = vrot.slane %v1324_v1, %v673_v59  ;;  %v895_v7 = vrot.slane %v1324_v1, %v1541_v53  ;;  %v923_v63 = vrot.slane %v1324_v1, %v685_v48  ;;  %v899_v11 = vrot.slane %v1324_v1, %v661_v5 }
 0x3bf   :  { %v919_v4 = vrot.slane %v1324_v1, %v1849_v2 }
 0x3c0   :  { %v940_v42 = vmul.f32 %v1734_v56, %v911_v62  ;;  %v932_v58 = vmul.f32 %v1692_v3, %v895_v7  ;;  %v946_v60 = vmul.f32 %v1723_v8, %v923_v63  ;;  %v933_v45 = vmul.f32 %v1694_v16, %v895_v7 }
 0x3c1   :  { %v934_v53 = vmul.f32 %v1701_v55, %v899_v11  ;;  %v935_v59 = vmul.f32 %v1705_v17, %v899_v11  ;;  %v903_v3 = vrot.slane %v1324_v1, %v665_v15  ;;  %v1847_v16 = vsub.s32 3, %v1537_v47 }
 0x3c2   :  { %990 = vperm.xlu0 %1242, %v940_v42   ;;  %950 = vperm.xlu1 %1241, %v932_v58   ;;  %v941_v17 = vmul.f32 %v1737_v20, %v911_v62  ;;  %v1848_v15 = vsub.s32 5, %v1537_v47  ;;  %v947_v20 = vmul.f32 %v1746_v54, %v923_v63 }
 0x3c3   :  { %v936_v48 = vmul.f32 %v1712_v26, %v903_v3  ;;  %v937_v8 = vmul.f32 %v1720_v51, %v903_v3  ;;  %v907_v56 = vrot.slane %v1324_v1, %v1847_v16 }
 0x3c4   :  { %v915_v14 = vrot.slane %v1324_v1, %v1848_v15 }
 0x3c5   :  { %v938_v5 = vmul.f32 %v1727_v46, %v907_v56  ;;  %v939_v55 = vmul.f32 %v1731_v49, %v907_v56  ;;  %v944_v46 = vmul.f32 %v1715_v27, %v919_v4  ;;  %v945_v49 = vmul.f32 %v1743_v44, %v919_v4 }
 0x3c6   :  { %1020 = vperm.xlu0 %1242, %v946_v60   ;;  %955 = vperm.xlu1 %1241, %v933_v45   ;;  %v942_v26 = vmul.f32 %v1708_v25, %v915_v14  ;;  %v943_v51 = vmul.f32 %v1740_v52, %v915_v14 }
 0x3ca   :  { %960 = vperm.xlu1 %1241, %v934_v53  }
 0x3ce   :  { %965 = vperm.xlu1 %1241, %v935_v59  }
 0x3d2   :  { %970 = vperm.xlu1 %1241, %v936_v48  }
 0x3d6   :  { %975 = vperm.xlu1 %1241, %v937_v8  }
 0x3da   :  { %980 = vperm.xlu1 %1241, %v938_v5  }
 0x3de   :  { %985 = vperm.xlu1 %1241, %v939_v55  }
 0x3e2   :  { %995 = vperm.xlu1 %1241, %v941_v17  }
 0x3e6   :  { %1000 = vperm.xlu1 %1241, %v942_v26  }
 0x3ea   :  { %1005 = vperm.xlu1 %1241, %v943_v51  }
 0x3ee   :  { %1010 = vperm.xlu1 %1241, %v944_v46  }
 0x3f2   :  { %1015 = vperm.xlu1 %1241, %v945_v49  }
 0x3f6   :  { %1025 = vperm.xlu1 %1241, %v947_v20  }
 0x43d   :  { %v951_v57 = vpop.permute.xlu1 %950  ;;  %v991_v6 = vpop.permute.xlu0 %990 }
 0x43e   :  { %v1028_v50 = vmul.f32 %v951_v57, %v1488_v12 }
 0x441   :  { %v956_v33 = vpop.permute.xlu1 %955  ;;  %v1021_v5 = vpop.permute.xlu0 %1020 }
 0x442   :  { %v1029_v44 = vmul.f32 %v956_v33, %v1490_v13  ;;  %v1042_v2 = vmul.f32 %v1021_v5, %v1530_v40 }
 0x444   :  { %v1044_v62 = vadd.f32 %v1029_v44, %v1028_v50 }
 0x445   :  { %v961_v43 = vpop.permute.xlu1 %960 }
 0x446   :  { %v1030_v18 = vmul.f32 %v961_v43, %v1494_v21 }
 0x449   :  { %v966_v25 = vpop.permute.xlu1 %965 }
 0x44a   :  { %v1031_v47 = vmul.f32 %v966_v25, %v1496_v22  ;;  %v1036_v22 = vmul.f32 %v991_v6, %v1510_v30 }
 0x44c   :  { %v1051_v10 = vadd.f32 %v1031_v47, %v1030_v18 }
 0x44d   :  { %v971_v32 = vpop.permute.xlu1 %970 }
 0x44e   :  { %v1032_v0 = vmul.f32 %v971_v32, %v1498_v23  ;;  %v1052_v42 = vrot.slane %v1051_v10, 4 }
 0x450   :  { %v1053_v60 = vadd.f32 %v1052_v42, %v1051_v10 }
 0x451   :  { %v976_v9 = vpop.permute.xlu1 %975 }
 0x452   :  { %v1033_v39 = vmul.f32 %v976_v9, %v1500_v24  ;;  %v1054_v48 = vrot.slane %v1053_v60, 2 }
 0x454   :  { %v1058_v24 = vadd.f32 %v1033_v39, %v1032_v0  ;;  %v1055_v14 = vadd.f32 %v1054_v48, %v1053_v60 }
 0x455   :  { %v981_v52 = vpop.permute.xlu1 %980 }
 0x456   :  { %v1034_v61 = vmul.f32 %v981_v52, %v1506_v28  ;;  %v1059_v21 = vrot.slane %v1058_v24, 4  ;;  %v1056_v25 = vrot.slane %v1055_v14, 1 }
 0x458   :  { %v1060_v28 = vadd.f32 %v1059_v21, %v1058_v24  ;;  %v1057_v6 = vadd.f32 %v1056_v25, %v1055_v14 }
 0x459   :  { %v986_v38 = vpop.permute.xlu1 %985 }
 0x45a   :  { %v1035_v54 = vmul.f32 %v986_v38, %v1508_v29  ;;  %v1045_v29 = vrot.slane %v1044_v62, 4  ;;  %v1061_v16 = vrot.slane %v1060_v28, 2 }
 0x45c   :  { %v1065_v7 = vadd.f32 %v1035_v54, %v1034_v61  ;;  %v1046_v30 = vadd.f32 %v1045_v29, %v1044_v62  ;;  %v1062_v4 = vadd.f32 %v1061_v16, %v1060_v28 }
 0x45d   :  { %v996_v27 = vpop.permute.xlu1 %995 }
 0x45e   :  { %v1037_v19 = vmul.f32 %v996_v27, %v1512_v31  ;;  %v1066_v63 = vrot.slane %v1065_v7, 4  ;;  %v1047_v55 = vrot.slane %v1046_v30, 2  ;;  %v1063_v52 = vrot.slane %v1062_v4, 1 }
 0x460   :  { %v1072_v13 = vadd.f32 %v1037_v19, %v1036_v22  ;;  %v1067_v53 = vadd.f32 %v1066_v63, %v1065_v7  ;;  %v1048_v49 = vadd.f32 %v1047_v55, %v1046_v30  ;;  %v1064_v54 = vadd.f32 %v1063_v52, %v1062_v4 }
 0x461   :  { %v1001_v1 = vpop.permute.xlu1 %1000 }
 0x462   :  { %v1038_v23 = vmul.f32 %v1001_v1, %v1518_v34  ;;  %v1073_v12 = vrot.slane %v1072_v13, 4  ;;  %v1068_v17 = vrot.slane %v1067_v53, 2 }
 0x464   :  { %v1074_v3 = vadd.f32 %v1073_v12, %v1072_v13  ;;  %v1069_v20 = vadd.f32 %v1068_v17, %v1067_v53 }
 0x465   :  { %v1006_v58 = vpop.permute.xlu1 %1005 }
 0x466   :  { %v1039_v31 = vmul.f32 %v1006_v58, %v1520_v35  ;;  %v1075_v15 = vrot.slane %v1074_v3, 2  ;;  %v1070_v38 = vrot.slane %v1069_v20, 1 }
 0x468   :  { %v1079_v45 = vadd.f32 %v1039_v31, %v1038_v23  ;;  %v1076_v43 = vadd.f32 %v1075_v15, %v1074_v3  ;;  %v1071_v19 = vadd.f32 %v1070_v38, %v1069_v20 }
 0x469   :  { %v1011_v11 = vpop.permute.xlu1 %1010 }
 0x46a   :  { %v1080_v59 = vrot.slane %v1079_v45, 4  ;;  %v1040_v34 = vmul.f32 %v1011_v11, %v1522_v36  ;;  %v1077_v27 = vrot.slane %v1076_v43, 1 }
 0x46c   :  { %v1081_v8 = vadd.f32 %v1080_v59, %v1079_v45  ;;  %v1078_v10 = vadd.f32 %v1077_v27, %v1076_v43 }
 0x46d   :  { %v1016_v56 = vpop.permute.xlu1 %1015 }
 0x46e   :  { %v1041_v35 = vmul.f32 %v1016_v56, %v1524_v37  ;;  %v1082_v26 = vrot.slane %v1081_v8, 2  ;;  %v1049_v37 = vrot.slane %v1048_v49, 1 }
 0x470   :  { %v1086_v51 = vadd.f32 %v1041_v35, %v1040_v34  ;;  %v1083_v32 = vadd.f32 %v1082_v26, %v1081_v8  ;;  %v1050_v0 = vadd.f32 %v1049_v37, %v1048_v49 }
 0x471   :  { %v1026_v46 = vpop.permute.xlu1 %1025 }
 0x472   :  { %v1087_v57 = vrot.slane %v1086_v51, 4  ;;  %v1043_v33 = vmul.f32 %v1026_v46, %v1532_v41  ;;  %v1084_v40 = vrot.slane %v1083_v32, 1  ;;  %v1108_v61 = vsel %vm635_vm2, %v1057_v6, %v1050_v0 }
 0x473   :  { %v1109_v1 = vsel %vm637_vm3, %v1064_v54, %v1108_v61 }
 0x474   :  { %v1088_v9 = vadd.f32 %v1087_v57, %v1086_v51  ;;  %v1093_v36 = vadd.f32 %v1043_v33, %v1042_v2  ;;  %v1085_v22 = vadd.f32 %v1084_v40, %v1083_v32  ;;  %v1110_v13 = vsel %vm639_vm4, %v1071_v19, %v1109_v1 }
 0x475   :  { %v1111_v42 = vsel %vm641_vm5, %v1078_v10, %v1110_v13 }
 0x476   :  { %v1089_v47 = vrot.slane %v1088_v9, 2  ;;  %v1094_v39 = vrot.slane %v1093_v36, 4  ;;  %v1112_v58 = vsel %vm643_vm6, %v1085_v22, %v1111_v42 }
 0x478   :  { %v1090_v44 = vadd.f32 %v1089_v47, %v1088_v9  ;;  %v1095_v18 = vadd.f32 %v1094_v39, %v1093_v36 }
 0x47a   :  { %v1091_v50 = vrot.slane %v1090_v44, 1  ;;  %v1096_v41 = vrot.slane %v1095_v18, 2 }
 0x47c   :  { %v1097_v24 = vadd.f32 %v1096_v41, %v1095_v18  ;;  %v1092_v62 = vadd.f32 %v1091_v50, %v1090_v44 }
 0x47e   :  { %v1098_v7 = vrot.slane %v1097_v24, 1  ;;  %v1113_v29 = vsel %vm645_vm7, %v1092_v62, %v1112_v58 }
 0x480   :  { %v1099_v21 = vadd.f32 %v1098_v7, %v1097_v24 }
 0x482   :  { %v1114_v63 = vsel %vm647_vm8, %v1099_v21, %v1113_v29 }
 0x483   :  { %1116 = vst [vmem:[#allocation10] sm:$0xff] %v1114_v63 }
 0x484   :  { %1416 = shalt.err (!%p1413_p10)
}
 0x485   :  { %1126 = dma.vmem_to_hbm [thread:$0]  %s1124_s15, 128, %s1843_s5, [#allocation4]  }
 0x486   :  { %1431 = dma.done.wait [#allocation4], 128  }
 0x487   :  { %1432 = vsyncadd [#allocation4], 4294967168 }
 0x488   :  { %1130 = vsyncpa [#allocation3], 1 }
 0x489   :  { %1131 = vsyncpa [#allocation6], 1 }
 0x48a   :  { %1132 = vsyncpa [#allocation9], 1 }
 0x48b   :  { %1133 = vsyncpa [#allocation4], 1 }

</bundles_post_ra>
